<compile_context>
chip_gen: v6e
topology: v6e:2x2x1
jax: 0.10.0
libtpu: 0.0.40
codegen_flags: <defaults>
</compile_context>

<pallas_src>
import functools

import jax
import jax.numpy as jnp
from jax.experimental import pallas as pl
from jax.experimental.pallas import tpu as pltpu

_LANE = 128


def _round_up(a, b):
    return (a + b - 1) // b * b


def _divisor_tile(limit, padded, align=_LANE):
    """Largest multiple of `align` that divides `padded` and is <= limit."""
    best = align
    cand = align
    top = min(limit, padded)
    while cand <= top:
        if padded % cand == 0:
            best = cand
        cand += align
    return best


def _device_defaults():
    """(row_tile, vmem_limit_bytes) derived from the device's VMEM capacity."""
    try:
        vmem = pltpu.get_tpu_info().vmem_capacity_bytes
    except Exception:  # unknown / query unavailable -> assume the small (v7x) case
        vmem = 64 * 1024 * 1024
    if vmem >= 96 * 1024 * 1024:          # v5e / v6e: 128 MiB VMEM per core
        return 512, 64 * 1024 * 1024
    return 256, 40 * 1024 * 1024          # v7x: 64 MiB VMEM per core


def pad_ffn_params(w1, b1, w2, b2, *, lane=_LANE):
    """Zero-pad weights/biases to lane-aligned shapes ONCE, outside the hot path.

    Padding is exact: padded W1 columns / b1 entries give h-lanes that are
    ReLU(0)=0, which multiply zero W2 rows; padded W2 columns / b2 entries give
    zero output lanes that are masked out of the LayerNorm.
    """
    total, ff = w1.shape
    total_p = _round_up(total, lane)
    ff_p = _round_up(ff, lane)
    if (total_p, ff_p) != (total, ff):
        w1 = jnp.pad(w1, ((0, total_p - total), (0, ff_p - ff)))
        w2 = jnp.pad(w2, ((0, ff_p - ff), (0, total_p - total)))
    if ff_p != b1.shape[-1]:
        b1 = jnp.pad(b1.reshape(-1), (0, ff_p - b1.shape[-1]))
    if total_p != b2.shape[-1]:
        b2 = jnp.pad(b2.reshape(-1), (0, total_p - b2.shape[-1]))
    return w1, b1, w2, b2


def _ffn_ln_kernel(x_ref, w1_ref, b1_ref, w2_ref, b2_ref, o_ref, acc_ref,
                   *, n_valid, eps):
    # x: (tm, total_p)  W1 slab: (total_p, tf)  b1 slab: (1, tf)
    # W2 slab: (tf, total_p)  b2: (1, total_p)  acc: (tm, total_p) f32
    j = pl.program_id(1)

    @pl.when(j == 0)
    def _init():
        acc_ref[...] = jnp.zeros_like(acc_ref)

    x = x_ref[...]                                   # keep native dtype for the MXU

    # Linear 1 (ff slab) + ReLU  (dropout1 = identity at inference)
    h = jnp.dot(x, w1_ref[...], preferred_element_type=jnp.float32)
    h = jnp.maximum(h + b1_ref[...].astype(jnp.float32), 0.0)

    # Partial Linear 2: accumulate this ff slab's contribution in f32.
    acc_ref[...] += jnp.dot(h.astype(x.dtype), w2_ref[...],
                            preferred_element_type=jnp.float32)

    @pl.when(j == pl.num_programs(1) - 1)
    def _epilogue():
        # bias2 + ReLU (dropout2 = identity) + residual, all in f32
        y = jnp.maximum(acc_ref[...] + b2_ref[...].astype(jnp.float32), 0.0)
        y = y + x.astype(jnp.float32)

        # LayerNorm over the first n_valid lanes; single masked pass
        # (sum + sum-of-squares -> two independent XLU reductions).
        inv_n = 1.0 / float(n_valid)
        if n_valid == y.shape[-1]:
            ym = y
        else:
            lane = jax.lax.broadcasted_iota(jnp.int32, y.shape, dimension=1)
            ym = jnp.where(lane < n_valid, y, 0.0)
        s1 = jnp.sum(ym, axis=-1, keepdims=True)
        s2 = jnp.sum(ym * ym, axis=-1, keepdims=True)
        mean = s1 * inv_n
        var = jnp.maximum(s2 * inv_n - mean * mean, 0.0)
        o_ref[...] = ((y - mean) * jax.lax.rsqrt(var + eps)).astype(o_ref.dtype)


@functools.partial(jax.jit, static_argnames=("tm", "tf", "eps"))
def positionwise_feedforward(x, w1, b1, w2, b2, *, tm=None, tf=512, eps=1e-5):
    """x: (batch, seq, total). Weights may be raw or pre-padded via pad_ffn_params."""
    batch, seq, total = x.shape
    rows = batch * seq

    default_tm, vmem_limit = _device_defaults()
    if tm is None:
        tm = default_tm

    # Padded feature / hidden extents (weights may already be lane-aligned).
    total_p = _round_up(w1.shape[0], _LANE)
    ff_p = _round_up(w1.shape[1], _LANE)

    # Pad params only when not already aligned (static checks -> pre-padded
    # callers trace zero pad ops; padding is hoisted into pad_ffn_params).
    if w1.shape != (total_p, ff_p):
        w1 = jnp.pad(w1, ((0, total_p - w1.shape[0]), (0, ff_p - w1.shape[1])))
    if w2.shape != (ff_p, total_p):
        w2 = jnp.pad(w2, ((0, ff_p - w2.shape[0]), (0, total_p - w2.shape[1])))
    if b1.shape[-1] != ff_p:
        b1 = jnp.pad(b1.reshape(-1), (0, ff_p - b1.shape[-1]))
    if b2.shape[-1] != total_p:
        b2 = jnp.pad(b2.reshape(-1), (0, total_p - b2.shape[-1]))
    b1 = b1.reshape(1, ff_p)
    b2 = b2.reshape(1, total_p)

    # Row tile (sublane-aligned, clamped for small problems) and ff tile
    # (128-aligned divisor of ff_p, default 512 = multiple of the 256 MXU dim).
    tm_eff = min(tm, _round_up(rows, 8))
    rows_p = _round_up(rows, tm_eff)
    tf_eff = _divisor_tile(tf, ff_p)

    x2d = x.reshape(rows, total)
    if rows_p != rows or total_p != total:
        x2d = jnp.pad(x2d, ((0, rows_p - rows), (0, total_p - total)))

    grid = (rows_p // tm_eff, ff_p // tf_eff)   # (parallel rows, ff reduction last)

    itemsize = x.dtype.itemsize
    cost = pl.CostEstimate(
        flops=4 * rows_p * total_p * ff_p,                       # two matmuls
        transcendentals=rows_p,                                  # one rsqrt / row
        bytes_accessed=(2 * rows_p * total_p * itemsize          # x in + out
                        + (w1.size + w2.size) * grid[0] * itemsize),
    )

    kernel = functools.partial(_ffn_ln_kernel, n_valid=total, eps=eps)

    out2d = pl.pallas_call(
        kernel,
        out_shape=jax.ShapeDtypeStruct((rows_p, total_p), x.dtype),
        grid_spec=pltpu.PrefetchScalarGridSpec(
            num_scalar_prefetch=0,
            grid=grid,
            in_specs=[
                pl.BlockSpec((tm_eff, total_p), lambda i, j: (i, 0)),   # x (resident over ff)
                pl.BlockSpec((total_p, tf_eff), lambda i, j: (0, j)),   # W1 slab
                pl.BlockSpec((1, tf_eff), lambda i, j: (0, j)),         # b1 slab
                pl.BlockSpec((tf_eff, total_p), lambda i, j: (j, 0)),   # W2 slab
                pl.BlockSpec((1, total_p), lambda i, j: (0, 0)),        # b2
            ],
            out_specs=pl.BlockSpec((tm_eff, total_p), lambda i, j: (i, 0)),
            scratch_shapes=[pltpu.VMEM((tm_eff, total_p), jnp.float32)],
        ),
        compiler_params=pltpu.CompilerParams(
            dimension_semantics=("parallel", "arbitrary"),
            vmem_limit_bytes=vmem_limit,
        ),
        cost_estimate=cost,
    )(x2d, w1, b1, w2, b2)

    if rows_p != rows or total_p != total:
        out2d = out2d[:rows, :total]
    return out2d.reshape(batch, seq, total)


def _init_linear(key, fan_in, fan_out, dtype=jnp.float32):
    # PyTorch nn.Linear default: U(-1/sqrt(fan_in), 1/sqrt(fan_in))
    kw, kb = jax.random.split(key)
    bound = 1.0 / (fan_in ** 0.5)
    w = jax.random.uniform(kw, (fan_in, fan_out), dtype, -bound, bound)
    b = jax.random.uniform(kb, (fan_out,), dtype, -bound, bound)
    return w, b


def _reference(x, w1, b1, w2, b2):
    h = jnp.maximum(x @ w1 + b1, 0.0)
    y = jnp.maximum(h @ w2 + b2, 0.0)
    y = y + x
    mean = jnp.mean(y, axis=-1, keepdims=True)
    var = jnp.mean((y - mean) ** 2, axis=-1, keepdims=True)
    return (y - mean) * jax.lax.rsqrt(var + 1e-5)


if __name__ == "__main__":
    # Config-like small shapes: num_head=4, hidden_size=8 -> total=32, ff=64
    num_head, hidden_size, ff = 4, 8, 64
    total = num_head * hidden_size
    batch, seq = 2, 8

    key = jax.random.PRNGKey(0)
    kx, k1, k2 = jax.random.split(key, 3)

    x = jax.random.normal(kx, (batch, seq, total), jnp.float32)
    w1, b1 = _init_linear(k1, total, ff)
    w2, b2 = _init_linear(k2, ff, total)

    # Hoist weight/bias padding out of the per-call path (done once).
    w1_p, b1_p, w2_p, b2_p = pad_ffn_params(w1, b1, w2, b2)

    # TODO(synk): nn.Dropout is train-time only; treated as identity (inference).
    out = positionwise_feedforward(x, w1_p, b1_p, w2_p, b2_p)
    out = jax.block_until_ready(out)

    ref = _reference(x, w1, b1, w2, b2)
    assert out.shape == (batch, seq, total)
    assert jnp.allclose(out, ref, atol=1e-4, rtol=1e-4), "mismatch vs reference"

    print("KERNEL_OK")
</pallas_src>

<mosaic_0001>
module attributes {stable_mosaic.version = 11 : i64} {
  func.func @_ffn_ln_kernel(%arg0: i32, %arg1: i32, %arg2: memref<16x128xf32, #tpu.memory_space<vmem>>, %arg3: memref<128x128xf32, #tpu.memory_space<vmem>>, %arg4: memref<1x128xf32, #tpu.memory_space<vmem>>, %arg5: memref<128x128xf32, #tpu.memory_space<vmem>>, %arg6: memref<1x128xf32, #tpu.memory_space<vmem>>, %arg7: memref<16x128xf32, #tpu.memory_space<vmem>>, %arg8: memref<16x128xf32, #tpu.memory_space<vmem>>) attributes {dimension_semantics = [#tpu.dimension_semantics<parallel>, #tpu.dimension_semantics<arbitrary>], iteration_bounds = array<i64: 1, 1>, scalar_prefetch = 0 : i64, scratch_operands = 1 : i64, tpu.core_type = #tpu.core_type<tc>, window_params = [{transform_indices = @transform_0, window_bounds = array<i64: 16, 128>}, {transform_indices = @transform_1, window_bounds = array<i64: 128, 128>}, {transform_indices = @transform_2, window_bounds = array<i64: 1, 128>}, {transform_indices = @transform_3, window_bounds = array<i64: 128, 128>}, {pipeline_mode = #tpu.pipeline_mode<synchronous>, transform_indices = @transform_4, window_bounds = array<i64: 1, 128>}, {transform_indices = @transform_5, window_bounds = array<i64: 16, 128>}]} {
    %c0_i32 = arith.constant 0 : i32
    %0 = arith.cmpi eq, %arg1, %c0_i32 : i32
    %1 = arith.extui %0 : i1 to i32
    %c0_i32_0 = arith.constant 0 : i32
    %2 = arith.cmpi ne, %1, %c0_i32_0 : i32
    scf.if %2 {
      %cst_16 = arith.constant 0.000000e+00 : f32
      %19 = vector.broadcast %cst_16 : f32 to vector<16x128xf32>
      %c0_17 = arith.constant 0 : index
      %c0_18 = arith.constant 0 : index
      %20 = vector.load %arg8[%c0_17, %c0_18] : memref<16x128xf32, #tpu.memory_space<vmem>>, vector<16x128xf32>
      tpu.vector_store %arg8[%c0_17, %c0_18], %19 {strides = array<i32>} : memref<16x128xf32, #tpu.memory_space<vmem>>, vector<16x128xf32>,
    } else {
    }
    %c0 = arith.constant 0 : index
    %c0_1 = arith.constant 0 : index
    %3 = vector.load %arg2[%c0, %c0_1] : memref<16x128xf32, #tpu.memory_space<vmem>>, vector<16x128xf32>
    %c0_2 = arith.constant 0 : index
    %c0_3 = arith.constant 0 : index
    %4 = vector.load %arg3[%c0_2, %c0_3] : memref<128x128xf32, #tpu.memory_space<vmem>>, vector<128x128xf32>
    %cst = arith.constant dense<0.000000e+00> : vector<16x128xf32>
    %5 = tpu.matmul %3, %4, %cst {dimension_numbers = #tpu.dot_dimension_numbers<[1], [0], [0], [1], [0, 0, 1, 1], [], []>} : vector<16x128xf32>, vector<128x128xf32>, vector<16x128xf32> -> vector<16x128xf32>
    %c0_4 = arith.constant 0 : index
    %c0_5 = arith.constant 0 : index
    %6 = vector.load %arg4[%c0_4, %c0_5] : memref<1x128xf32, #tpu.memory_space<vmem>>, vector<1x128xf32>
    %7 = vector.broadcast %6 : vector<1x128xf32> to vector<16x128xf32>
    %8 = arith.addf %5, %7 : vector<16x128xf32>
    %cst_6 = arith.constant 0.000000e+00 : f32
    %9 = vector.broadcast %cst_6 : f32 to vector<16x128xf32>
    %10 = arith.maximumf %8, %9 : vector<16x128xf32>
    %c0_7 = arith.constant 0 : index
    %c0_8 = arith.constant 0 : index
    %11 = vector.load %arg8[%c0_7, %c0_8] : memref<16x128xf32, #tpu.memory_space<vmem>>, vector<16x128xf32>
    %c0_9 = arith.constant 0 : index
    %c0_10 = arith.constant 0 : index
    %12 = vector.load %arg5[%c0_9, %c0_10] : memref<128x128xf32, #tpu.memory_space<vmem>>, vector<128x128xf32>
    %cst_11 = arith.constant dense<0.000000e+00> : vector<16x128xf32>
    %13 = tpu.matmul %10, %12, %cst_11 {dimension_numbers = #tpu.dot_dimension_numbers<[1], [0], [0], [1], [0, 0, 1, 1], [], []>} : vector<16x128xf32>, vector<128x128xf32>, vector<16x128xf32> -> vector<16x128xf32>
    %14 = arith.addf %11, %13 : vector<16x128xf32>
    %c0_12 = arith.constant 0 : index
    %c0_13 = arith.constant 0 : index
    %15 = vector.load %arg8[%c0_12, %c0_13] : memref<16x128xf32, #tpu.memory_space<vmem>>, vector<16x128xf32>
    tpu.vector_store %arg8[%c0_12, %c0_13], %14 {strides = array<i32>} : memref<16x128xf32, #tpu.memory_space<vmem>>, vector<16x128xf32>,
    %c0_i32_14 = arith.constant 0 : i32
    %16 = arith.cmpi eq, %arg1, %c0_i32_14 : i32
    %17 = arith.extui %16 : i1 to i32
    %c0_i32_15 = arith.constant 0 : i32
    %18 = arith.cmpi ne, %17, %c0_i32_15 : i32
    scf.if %18 {
      %c0_16 = arith.constant 0 : index
      %c0_17 = arith.constant 0 : index
      %19 = vector.load %arg8[%c0_16, %c0_17] : memref<16x128xf32, #tpu.memory_space<vmem>>, vector<16x128xf32>
      %c0_18 = arith.constant 0 : index
      %c0_19 = arith.constant 0 : index
      %20 = vector.load %arg6[%c0_18, %c0_19] : memref<1x128xf32, #tpu.memory_space<vmem>>, vector<1x128xf32>
      %21 = vector.broadcast %20 : vector<1x128xf32> to vector<16x128xf32>
      %22 = arith.addf %19, %21 : vector<16x128xf32>
      %cst_20 = arith.constant 0.000000e+00 : f32
      %23 = vector.broadcast %cst_20 : f32 to vector<16x128xf32>
      %24 = arith.maximumf %22, %23 : vector<16x128xf32>
      %25 = arith.addf %24, %3 : vector<16x128xf32>
      %26 = tpu.iota {dimensions = array<i32: 1>} : vector<16x128xi32>
      %c32_i32 = arith.constant 32 : i32
      %27 = vector.broadcast %c32_i32 : i32 to vector<16x128xi32>
      %28 = arith.cmpi slt, %26, %27 : vector<16x128xi32>
      %cst_21 = arith.constant 0.000000e+00 : f32
      %29 = vector.broadcast %cst_21 : f32 to vector<16x128xf32>
      %30 = arith.select %28, %25, %29 : vector<16x128xi1>, vector<16x128xf32>
      %cst_22 = arith.constant dense<0.000000e+00> : vector<16xf32>
      %31 = vector.multi_reduction <add>, %30, %cst_22 [1] : vector<16x128xf32> to vector<16xf32>
      %32 = vector.shape_cast %31 : vector<16xf32> to vector<16x1xf32>
      %33 = arith.mulf %30, %30 : vector<16x128xf32>
      %cst_23 = arith.constant dense<0.000000e+00> : vector<16xf32>
      %34 = vector.multi_reduction <add>, %33, %cst_23 [1] : vector<16x128xf32> to vector<16xf32>
      %35 = vector.shape_cast %34 : vector<16xf32> to vector<16x1xf32>
      %cst_24 = arith.constant 3.125000e-02 : f32
      %36 = vector.broadcast %cst_24 : f32 to vector<16x1xf32>
      %37 = arith.mulf %32, %36 : vector<16x1xf32>
      %cst_25 = arith.constant 3.125000e-02 : f32
      %38 = vector.broadcast %cst_25 : f32 to vector<16x1xf32>
      %39 = arith.mulf %35, %38 : vector<16x1xf32>
      %40 = arith.mulf %37, %37 : vector<16x1xf32>
      %41 = arith.subf %39, %40 : vector<16x1xf32>
      %cst_26 = arith.constant 0.000000e+00 : f32
      %42 = vector.broadcast %cst_26 : f32 to vector<16x1xf32>
      %43 = arith.maximumf %41, %42 : vector<16x1xf32>
      %44 = vector.broadcast %37 : vector<16x1xf32> to vector<16x128xf32>
      %45 = arith.subf %25, %44 : vector<16x128xf32>
      %cst_27 = arith.constant 9.99999974E-6 : f32
      %46 = vector.broadcast %cst_27 : f32 to vector<16x1xf32>
      %47 = arith.addf %43, %46 : vector<16x1xf32>
      %48 = math.rsqrt %47 : vector<16x1xf32>
      %49 = vector.broadcast %48 : vector<16x1xf32> to vector<16x128xf32>
      %50 = arith.mulf %45, %49 : vector<16x128xf32>
      %c0_28 = arith.constant 0 : index
      %c0_29 = arith.constant 0 : index
      %51 = vector.load %arg7[%c0_28, %c0_29] : memref<16x128xf32, #tpu.memory_space<vmem>>, vector<16x128xf32>
      tpu.vector_store %arg7[%c0_28, %c0_29], %50 {strides = array<i32>} : memref<16x128xf32, #tpu.memory_space<vmem>>, vector<16x128xf32>,
    } else {
    }
    return
  }
  func.func @transform_0(%arg0: i32, %arg1: i32) -> (i32, i32) {
    %c0_i32 = arith.constant 0 : i32
    %c0_i32_0 = arith.constant 0 : i32
    return %arg0, %c0_i32 : i32, i32
  }
  func.func @transform_1(%arg0: i32, %arg1: i32) -> (i32, i32) {
    %c0_i32 = arith.constant 0 : i32
    %c0_i32_0 = arith.constant 0 : i32
    return %c0_i32, %arg1 : i32, i32
  }
  func.func @transform_2(%arg0: i32, %arg1: i32) -> (i32, i32) {
    %c0_i32 = arith.constant 0 : i32
    %c0_i32_0 = arith.constant 0 : i32
    return %c0_i32, %arg1 : i32, i32
  }
  func.func @transform_3(%arg0: i32, %arg1: i32) -> (i32, i32) {
    %c0_i32 = arith.constant 0 : i32
    %c0_i32_0 = arith.constant 0 : i32
    return %arg1, %c0_i32 : i32, i32
  }
  func.func @transform_4(%arg0: i32, %arg1: i32) -> (i32, i32) {
    %c0_i32 = arith.constant 0 : i32
    %c0_i32_0 = arith.constant 0 : i32
    %c0_i32_1 = arith.constant 0 : i32
    return %c0_i32, %c0_i32_0 : i32, i32
  }
  func.func @transform_5(%arg0: i32, %arg1: i32) -> (i32, i32) {
    %c0_i32 = arith.constant 0 : i32
    %c0_i32_0 = arith.constant 0 : i32
    return %arg0, %c0_i32 : i32, i32
  }
}

</mosaic_0001>

<bundles_post_ra>
// kernel: positionwise_feedforward.1
= control target key start
LH: loop header
LB: loop body
LE: loop exit
PB: predicated region body
PF: predicated region fallthrough
CT: control target
= control target key end

     0   :  { %10 = vsyncpa [#allocation4], 0  ;;  %s534_s0 = inlined_call_operand.vmem [shape: f32[16,128], index: 0, kind: input, shape index: {}]   ;;  %s535_s1 = inlined_call_operand.hbm [shape: f32[128,128], index: 1, kind: input, shape index: {}]   ;;  %s536_s2 = inlined_call_operand.vmem [shape: f32[1,128], index: 2, kind: input, shape index: {}]   ;;  %s537_s3 = inlined_call_operand.hbm [shape: f32[128,128], index: 3, kind: input, shape index: {}]   ;;  %s538_s4 = inlined_call_operand.vmem [shape: f32[1,128], index: 4, kind: input, shape index: {}]   ;;  %s539_s5 = inlined_call_operand.vmem [shape: f32[16,128], index: 5, kind: output, shape index: {}]  }
   0x1   :  { %11 = vsyncpa [#allocation6], 0  ;;  %s472_s18 = smov [#allocation3]  }
   0x2   :  { %s19_s19 = sshll.u32 %s472_s18, 4  ;;  %s20_s19 = int_to_ptr.vmem [resolvable:$true] %s19_s19 }
   0x3   :  { %s436_s20 = scalar_lea.vmem %s20_s19, 2048  ;;  %p441_p1 = scmp.lt.s32.totalorder %s20_s19, %s20_s19 }
   0x4   :  { %p437_p0 = scmp.ne.s32.totalorder %s20_s19, %s436_s20  ;;  %p442_p2 = scmp.lt.s32.totalorder %s436_s20, %s436_s20 }
   0x6   :  { %p443_p3 = por %p442_p2, %p441_p1 }
   0x8   :  { %p444_p4 = pnand %p443_p3, %p437_p0 }
   0xa   :  { %447 = shalt.err (!%p444_p4)
}
   0xb   :  { %s473_s21 = smov 128   ;;  %s474_s22 = smov 8  }
   0xc   :  { %25 = dma.hbm_to_vmem [thread:$0]  %s535_s1, 2048, %s20_s19, [#allocation4], %s473_s21, %s473_s21, %s474_s22  }
   0xd   :  { %s475_s25 = smov [#allocation5]  }
   0xe   :  { %s33_s26 = sshll.u32 %s475_s25, 4  ;;  %s34_s26 = int_to_ptr.vmem [resolvable:$true] %s33_s26 }
   0xf   :  { %s456_s27 = scalar_lea.vmem %s34_s26, 2048  ;;  %p461_p6 = scmp.lt.s32.totalorder %s34_s26, %s34_s26 }
  0x10   :  { %p457_p5 = scmp.ne.s32.totalorder %s34_s26, %s456_s27  ;;  %p462_p7 = scmp.lt.s32.totalorder %s456_s27, %s456_s27 }
  0x12   :  { %p463_p8 = por %p462_p7, %p461_p6 }
  0x14   :  { %p464_p9 = pnand %p463_p8, %p457_p5 }
  0x16   :  { %467 = shalt.err (!%p464_p9)
}
  0x17   :  { %39 = dma.hbm_to_vmem [thread:$0]  %s537_s3, 2048, %s34_s26, [#allocation6], %s473_s21, %s473_s21, %s474_s22  }
  0x18   :  { %468 = dma.done.wait [#allocation4], 2048  }
  0x19   :  { %469 = vsyncadd [#allocation4], 4294965248 }
  0x1a   :  { %470 = dma.done.wait [#allocation6], 2048  }
  0x1b   :  { %471 = vsyncadd [#allocation6], 4294965248  ;;  %v71_v0 = vld [vmem:[#allocation3 + $0x78] sm:$0xff]  ;;  %v70_v1 = vld [vmem:[#allocation3 + $0x70] sm:$0xff]  ;;  %v271_v43 = vlaneseq }
  0x1c   :  { %350 = vmatprep.subr.mxu0 %v71_v0  ;;  %v69_v2 = vld [vmem:[#allocation3 + $0x68] sm:$0xff]  ;;  %v68_v3 = vld [vmem:[#allocation3 + $0x60] sm:$0xff]  ;;  %v67_v5 = vld [vmem:[#allocation3 + $0x58] sm:$0xff] }
  0x1d   :  { %351 = vmatpush3.msra.mxu0 %v71_v0  ;;  %v515_v4 = vld [vmem:[%s534_s0] sm:$0xff]  ;;  %v173_v6 = vld [vmem:[#allocation5 + $0x78] sm:$0xff]  ;;  %v172_v7 = vld [vmem:[#allocation5 + $0x70] sm:$0xff]  ;;  %v272_v48 = vand.u32 127, %v271_v43 }
  0x1e   :  { %352 = vmatprep.subr.mxu0 %v70_v1  ;;  %382 = vmatprep.mubr.f32.mxu0 %v515_v4  ;;  %v66_v8 = vld [vmem:[#allocation3 + $0x50] sm:$0xff]  ;;  %v171_v9 = vld [vmem:[#allocation5 + $0x68] sm:$0xff]  ;;  %v170_v11 = vld [vmem:[#allocation5 + $0x60] sm:$0xff] }
  0x1f   :  { %353 = vmatpush3.msra.mxu0 %v70_v1  ;;  %385 = vmatprep.subr.mxu1 %v173_v6  ;;  %v65_v10 = vld [vmem:[#allocation3 + $0x48] sm:$0xff]  ;;  %v64_v12 = vld [vmem:[#allocation3 + $0x40] sm:$0xff]  ;;  %v169_v13 = vld [vmem:[#allocation5 + $0x58] sm:$0xff]  ;;  %vm273_vm0 = vcmp.lt.s32.totalorder %v272_v48, 32 }
  0x20   :  { %354 = vmatprep.subr.mxu0 %v69_v2  ;;  %386 = vmatpush3.msra.mxu1 %v173_v6  ;;  %v63_v14 = vld [vmem:[#allocation3 + $0x38] sm:$0xff]  ;;  %v168_v15 = vld [vmem:[#allocation5 + $0x50] sm:$0xff]  ;;  %v167_v17 = vld [vmem:[#allocation5 + $0x48] sm:$0xff] }
  0x21   :  { %355 = vmatpush3.msra.mxu0 %v69_v2  ;;  %387 = vmatprep.subr.mxu1 %v172_v7  ;;  %v62_v16 = vld [vmem:[#allocation3 + $0x30] sm:$0xff]  ;;  %v61_v18 = vld [vmem:[#allocation3 + $0x28] sm:$0xff]  ;;  %v166_v19 = vld [vmem:[#allocation5 + $0x40] sm:$0xff] }
  0x22   :  { %356 = vmatprep.subr.mxu0 %v68_v3  ;;  %388 = vmatpush3.msra.mxu1 %v172_v7  ;;  %v60_v20 = vld [vmem:[#allocation3 + $0x20] sm:$0xff]  ;;  %v165_v21 = vld [vmem:[#allocation5 + $0x38] sm:$0xff]  ;;  %v164_v23 = vld [vmem:[#allocation5 + $0x30] sm:$0xff] }
  0x23   :  { %357 = vmatpush3.msra.mxu0 %v68_v3  ;;  %389 = vmatprep.subr.mxu1 %v171_v9  ;;  %v59_v22 = vld [vmem:[#allocation3 + $0x18] sm:$0xff]  ;;  %v58_v24 = vld [vmem:[#allocation3 + $0x10] sm:$0xff]  ;;  %v163_v25 = vld [vmem:[#allocation5 + $0x28] sm:$0xff] }
  0x24   :  { %358 = vmatprep.subr.mxu0 %v67_v5  ;;  %390 = vmatpush3.msra.mxu1 %v171_v9  ;;  %v57_v26 = vld [vmem:[#allocation3 + $0x8] sm:$0xff]  ;;  %v162_v27 = vld [vmem:[#allocation5 + $0x20] sm:$0xff]  ;;  %v161_v30 = vld [vmem:[#allocation5 + $0x18] sm:$0xff] }
  0x25   :  { %359 = vmatpush3.msra.mxu0 %v67_v5  ;;  %391 = vmatprep.subr.mxu1 %v170_v11  ;;  %v56_v28 = vld [vmem:[#allocation3] sm:$0xff]  ;;  %v55_v29 = vld [vmem:[%s534_s0 + $0x8] sm:$0xff]  ;;  %v160_v31 = vld [vmem:[#allocation5 + $0x10] sm:$0xff] }
  0x26   :  { %360 = vmatprep.subr.mxu0 %v66_v8  ;;  %392 = vmatpush3.msra.mxu1 %v170_v11  ;;  %v159_v32 = vld [vmem:[#allocation5 + $0x8] sm:$0xff]  ;;  %v158_v33 = vld [vmem:[#allocation5] sm:$0xff] }
  0x27   :  { %361 = vmatpush3.msra.mxu0 %v66_v8  ;;  %393 = vmatprep.subr.mxu1 %v169_v13  ;;  %v312_v34 = vld [vmem:[%s536_s2] ss:$0 sm:$0xff] }
  0x28   :  { %362 = vmatprep.subr.mxu0 %v65_v10  ;;  %394 = vmatpush3.msra.mxu1 %v169_v13  ;;  %v313_v41 = vld [vmem:[%s538_s4] ss:$0 sm:$0xff] }
  0x29   :  { %363 = vmatpush3.msra.mxu0 %v65_v10  ;;  %395 = vmatprep.subr.mxu1 %v168_v15 }
  0x2a   :  { %364 = vmatprep.subr.mxu0 %v64_v12  ;;  %396 = vmatpush3.msra.mxu1 %v168_v15 }
  0x2b   :  { %365 = vmatpush3.msra.mxu0 %v64_v12  ;;  %397 = vmatprep.subr.mxu1 %v167_v17 }
  0x2c   :  { %366 = vmatprep.subr.mxu0 %v63_v14  ;;  %398 = vmatpush3.msra.mxu1 %v167_v17 }
  0x2d   :  { %367 = vmatpush3.msra.mxu0 %v63_v14  ;;  %399 = vmatprep.subr.mxu1 %v166_v19 }
  0x2e   :  { %368 = vmatprep.subr.mxu0 %v62_v16  ;;  %400 = vmatpush3.msra.mxu1 %v166_v19 }
  0x2f   :  { %369 = vmatpush3.msra.mxu0 %v62_v16  ;;  %401 = vmatprep.subr.mxu1 %v165_v21 }
  0x30   :  { %370 = vmatprep.subr.mxu0 %v61_v18  ;;  %402 = vmatpush3.msra.mxu1 %v165_v21 }
  0x31   :  { %371 = vmatpush3.msra.mxu0 %v61_v18  ;;  %403 = vmatprep.subr.mxu1 %v164_v23 }
  0x32   :  { %372 = vmatprep.subr.mxu0 %v60_v20  ;;  %404 = vmatpush3.msra.mxu1 %v164_v23 }
  0x33   :  { %373 = vmatpush3.msra.mxu0 %v60_v20  ;;  %405 = vmatprep.subr.mxu1 %v163_v25 }
  0x34   :  { %374 = vmatprep.subr.mxu0 %v59_v22  ;;  %406 = vmatpush3.msra.mxu1 %v163_v25 }
  0x35   :  { %375 = vmatpush3.msra.mxu0 %v59_v22  ;;  %407 = vmatprep.subr.mxu1 %v162_v27 }
  0x36   :  { %376 = vmatprep.subr.mxu0 %v58_v24  ;;  %408 = vmatpush3.msra.mxu1 %v162_v27 }
  0x37   :  { %377 = vmatpush3.msra.mxu0 %v58_v24  ;;  %409 = vmatprep.subr.mxu1 %v161_v30 }
  0x38   :  { %378 = vmatprep.subr.mxu0 %v57_v26  ;;  %410 = vmatpush3.msra.mxu1 %v161_v30 }
  0x39   :  { %379 = vmatpush3.msra.mxu0 %v57_v26  ;;  %411 = vmatprep.subr.mxu1 %v160_v31 }
  0x3a   :  { %380 = vmatprep.subr.mxu0 %v56_v28  ;;  %412 = vmatpush3.msra.mxu1 %v160_v31 }
  0x3b   :  { %381 = vmatpush3.msra.mxu0 %v56_v28  ;;  %413 = vmatprep.subr.mxu1 %v159_v32 }
  0x3c   :  { %383 = vmatmul.mubr.f32.vlgmr.msra.gmra.mxu0 %v55_v29  ;;  %414 = vmatpush3.msra.mxu1 %v159_v32 }
  0x3d   :  { %415 = vmatprep.subr.mxu1 %v158_v33 }
  0x3e   :  { %416 = vmatpush3.msra.mxu1 %v158_v33 }
  0xfc   :  { %v384_v35 = vpop.f32.mrf.mxu0 }
  0xfd   :  { %v151_v36 = vadd.f32 %v384_v35, %v312_v34 }
  0xfe   :  { %v145_v37 = vpop.f32.mrf.mxu0 }
  0xff   :  { %v146_v38 = vadd.f32 %v312_v34, %v145_v37  ;;  %v155_v40 = vmax.f32 %v151_v36, 0.0 }
 0x101   :  { %v154_v39 = vmax.f32 %v146_v38, 0.0 }
 0x103   :  { %417 = vmatprep.mubr.f32.mxu1 %v154_v39 }
 0x104   :  { %418 = vmatmul.mubr.f32.vlgmr.msra.gmra.mxu1 %v155_v40 }
 0x1c4   :  { %v419_v42 = vpop.f32.mrf.mxu1 }
 0x1c5   :  { %v266_v44 = vadd.f32 %v419_v42, %v313_v41 }
 0x1c6   :  { %v240_v45 = vpop.f32.mrf.mxu1 }
 0x1c7   :  { %v268_v46 = vmax.f32 %v266_v44, 0.0  ;;  %v265_v47 = vadd.f32 %v313_v41, %v240_v45 }
 0x1c9   :  { %v267_v49 = vmax.f32 %v265_v47, 0.0  ;;  %v270_v51 = vadd.f32 %v268_v46, %v55_v29 }
 0x1cb   :  { %v269_v50 = vadd.f32 %v267_v49, %v515_v4  ;;  %v275_v54 = vsel %vm273_vm0, %v270_v51, 0.0 }
 0x1cc   :  { %v281_v55 = vmul.f32 %v275_v54, %v275_v54 }
 0x1cd   :  { %v274_v52 = vsel %vm273_vm0, %v269_v50, 0.0 }
 0x1ce   :  { %276 = vadd.xlane.f32.xlu0 %v274_v52  ;;  %v280_v53 = vmul.f32 %v274_v52, %v274_v52 }
 0x1d0   :  { %282 = vadd.xlane.f32.xlu1 %v280_v53 }
 0x1d2   :  { %278 = vadd.xlane.f32.xlu0 %v275_v54 }
 0x1d4   :  { %284 = vadd.xlane.f32.xlu1 %v281_v55 }
 0x257   :  { %v277_v56 = vpop.xlane.xlu0 %276 }
 0x258   :  { %v286_v57 = vmul.f32 0.03125, %v277_v56 }
 0x259   :  { %v283_v58 = vpop.xlane.xlu1 %282 }
 0x25a   :  { %v290_v59 = vmul.f32 %v286_v57, %v286_v57  ;;  %v288_v60 = vmul.f32 0.03125, %v283_v58  ;;  %v296_v8 = vsub.f32 %v269_v50, %v286_v57 }
 0x25b   :  { %v279_v61 = vpop.xlane.xlu0 %278 }
 0x25c   :  { %v292_v62 = vsub.f32 %v288_v60, %v290_v59  ;;  %v287_v63 = vmul.f32 0.03125, %v279_v61 }
 0x25d   :  { %v285_v0 = vpop.xlane.xlu1 %284 }
 0x25e   :  { %v294_v1 = vmax.f32 %v292_v62, 0.0  ;;  %v291_v2 = vmul.f32 %v287_v63, %v287_v63  ;;  %v289_v3 = vmul.f32 0.03125, %v285_v0  ;;  %v297_v11 = vsub.f32 %v270_v51, %v287_v63 }
 0x260   :  { %v298_v4 = vadd.f32 1e-05, %v294_v1  ;;  %v293_v5 = vsub.f32 %v289_v3, %v291_v2 }
 0x262   :  { %424 = vrsqrt.f32 %v298_v4  ;;  %v295_v6 = vmax.f32 %v293_v5, 0.0 }
 0x264   :  { %v299_v7 = vadd.f32 1e-05, %v295_v6 }
 0x266   :  { %426 = vrsqrt.f32 %v299_v7 }
 0x26f   :  { %v425_v9 = vpop.eup %424 }
 0x270   :  { %v302_v10 = vmul.f32 %v425_v9, %v296_v8 }
 0x272   :  { %304 = vst [vmem:[%s539_s5] sm:$0xff] %v302_v10 }
 0x273   :  { %v427_v12 = vpop.eup %426 }
 0x274   :  { %v303_v13 = vmul.f32 %v427_v12, %v297_v11 }
 0x276   :  { %305 = vst [vmem:[%s539_s5 + $0x8] sm:$0xff] %v303_v13 }
 0x277   :  { %310 = vsyncpa [#allocation4], 1 }
 0x278   :  { %311 = vsyncpa [#allocation6], 1 }

</bundles_post_ra>
